<compile_context>
chip_gen: v7x
topology: tpu7x:2x2x1
jax: 0.10.0
libtpu: 0.0.40
codegen_flags: <defaults>
</compile_context>

<pallas_src>
import jax
import jax.numpy as jnp
import numpy as np
from jax.experimental import pallas as pl
from jax.experimental.pallas import tpu as pltpu


# ----------------------------------------------------------------------------
# Kernel
# ----------------------------------------------------------------------------
def qc_head_kernel(x_ref, attn_ref, tok_ref, spec_ref, w_ref, b_ref,
                   start_ref, end_ref, mask_ref):
    neg_inf = jnp.float32(-jnp.inf)

    # --- mask epilogue, lane-dense over the whole (1, 1, N) row --------------
    attn = attn_ref[...]                                   # (1, 1, N) int32
    tok = tok_ref[...]
    spec = spec_ref[...]
    real_mask = (attn == tok).astype(jnp.int32) - spec     # values in {-1, 0, 1}
    mask_ref[...] = real_mask
    keep = real_mask == 1                                  # (1, 1, N) bool

    # --- single MXU contraction for the whole block --------------------------
    # (8, H) x (N, H)^T -> (8, N): rows 0/1 are start/end heads, N lane-dense.
    logits = jax.lax.dot_general(
        w_ref[...], x_ref[...],
        dimension_numbers=(((1,), (1,)), ((), ())),
        preferred_element_type=jnp.float32)                # (8, N) f32

    b_start = b_ref[0]                                     # SMEM scalars
    b_end = b_ref[1]

    start_ref[...] = jnp.where(keep, logits[0:1, :] + b_start, neg_inf)
    end_ref[...] = jnp.where(keep, logits[1:2, :] + b_end, neg_inf)


# ----------------------------------------------------------------------------
# Tiling / chip config
# ----------------------------------------------------------------------------
def _round_up(x, m):
    return ((x + m - 1) // m) * m


def _x_tile_bytes(bt, S, H, itemsize):
    n = bt * S
    return _round_up(n, 8) * _round_up(H, 128) * itemsize


def _footprint_bytes(bt, S, H, itemsize):
    """Padding-aware, double-buffered VMEM footprint for a (bt*S)-row block."""
    n = bt * S
    h_pad = _round_up(H, 128)
    x_tile = _round_up(n, 8) * h_pad * itemsize
    # 3 int32 mask inputs + 3 outputs, each a (1, 1, n) tile padded to 8 sublanes.
    mask_out = 6 * 8 * _round_up(n, 128) * 4
    w_tile = 8 * h_pad * 4
    return 2 * (x_tile + mask_out + w_tile)     # x2 for double buffering


def _chip_config():
    kind = ""
    try:
        kind = jax.devices()[0].device_kind.lower()
    except Exception:
        pass
    if "v7" in kind:
        # 2 TensorCores, 64 MiB physical VMEM per TC: big tiles, even block count.
        return dict(x_budget=12 << 20, vmem_limit=48 << 20, prefer_even_blocks=True)
    if "v6" in kind:
        # 1 TC, 128 MiB physical VMEM: take the biggest tile that fits.
        return dict(x_budget=16 << 20, vmem_limit=64 << 20, prefer_even_blocks=False)
    if "v5e" in kind or "v5 lite" in kind or "v5lite" in kind:
        # 1 TC, lower HBM BW: ~4 MiB tiles already amortize per-step overhead.
        return dict(x_budget=4 << 20, vmem_limit=32 << 20, prefer_even_blocks=False)
    return dict(x_budget=4 << 20, vmem_limit=32 << 20, prefer_even_blocks=False)


def _pick_bt(B, S, H, itemsize, x_budget, vmem_limit, prefer_even_blocks):
    """Largest divisor of B whose padded, double-buffered tile set fits VMEM.

    Blocks of the flat (B*S, H) activation must keep the sublane dim a multiple
    of 8 unless there is a single block.  On two-TC parts (v7x) we prefer an
    even number of blocks so the 'parallel' axis splits evenly across cores.
    """
    # TODO(synk): for prime/awkward B this degenerates to tiny blocks; pad B or
    # allow a ragged last block upstream if that ever matters in production.
    aligned = [bt for bt in range(1, B + 1)
               if B % bt == 0 and (B // bt == 1 or (bt * S) % 8 == 0)]
    fits = [bt for bt in aligned
            if _x_tile_bytes(bt, S, H, itemsize) <= x_budget
            and _footprint_bytes(bt, S, H, itemsize) <= int(0.8 * vmem_limit)]
    pool = fits if fits else [min(aligned)]
    if prefer_even_blocks and B > 1:
        even = [bt for bt in pool if (B // bt) % 2 == 0]
        if even:
            return max(even)
    return max(pool)


# ----------------------------------------------------------------------------
# Wrapper
# ----------------------------------------------------------------------------
def qc_self_attn_head(output, attention_mask, token_type_ids,
                      special_tokens_mask, W, b):
    """output: (B, S, H); masks: (B, S) int; W: (2, H) [row0=start, row1=end];
    b: (2,) f32. Returns (start_logits, end_logits, real_mask), each (B, S)."""
    B, S, H = output.shape
    itemsize = jnp.dtype(output.dtype).itemsize
    cfg = _chip_config()
    Bt = _pick_bt(B, S, H, itemsize,
                  cfg["x_budget"], cfg["vmem_limit"], cfg["prefer_even_blocks"])
    num_blocks = B // Bt
    N = Bt * S

    # Free, contiguous host-side reshapes (no data movement):
    x_flat = output.reshape(B * S, H)
    attn_f = attention_mask.astype(jnp.int32).reshape(num_blocks, 1, N)
    tok_f = token_type_ids.astype(jnp.int32).reshape(num_blocks, 1, N)
    spec_f = special_tokens_mask.astype(jnp.int32).reshape(num_blocks, 1, N)

    # Pad W to 8 rows so the MXU operand is tile-aligned (rows 2..7 unused).
    w8 = jnp.zeros((8, H), jnp.float32).at[:2].set(W.astype(jnp.float32))
    b_smem = b.reshape(2).astype(jnp.float32)

    row_spec = pl.BlockSpec((1, 1, N), lambda i: (i, 0, 0))

    cost = pl.CostEstimate(
        flops=4 * B * S * H,                       # 2 heads x 2*H flops / position
        transcendentals=0,
        bytes_accessed=(B * S * H * itemsize       # activations
                        + 3 * B * S * 4            # int32 masks
                        + 8 * H * 4 + 8            # W, bias
                        + B * S * 12))             # start/end f32 + mask i32

    start_f, end_f, mask_f = pl.pallas_call(
        qc_head_kernel,
        out_shape=(
            jax.ShapeDtypeStruct((num_blocks, 1, N), jnp.float32),
            jax.ShapeDtypeStruct((num_blocks, 1, N), jnp.float32),
            jax.ShapeDtypeStruct((num_blocks, 1, N), jnp.int32),
        ),
        grid_spec=pltpu.PrefetchScalarGridSpec(
            num_scalar_prefetch=0,
            grid=(num_blocks,),
            in_specs=[
                pl.BlockSpec((N, H), lambda i: (i, 0)),             # activations
                row_spec,                                           # attention_mask
                row_spec,                                           # token_type_ids
                row_spec,                                           # special_tokens_mask
                pl.BlockSpec((8, H), lambda i: (0, 0)),             # W (padded), once
                pl.BlockSpec(memory_space=pltpu.MemorySpace.SMEM),  # bias scalars
            ],
            out_specs=[row_spec, row_spec, row_spec],
        ),
        compiler_params=pltpu.CompilerParams(
            dimension_semantics=("parallel",),
            vmem_limit_bytes=cfg["vmem_limit"]),
        cost_estimate=cost,
    )(x_flat, attn_f, tok_f, spec_f, w8, b_smem)

    # TODO(synk): if production H is not a multiple of 128 (e.g. small heads),
    # consider a (B, H, S) activation layout upstream so the x tile is
    # lane-dense in S instead of lane-padded in H.
    return start_f.reshape(B, S), end_f.reshape(B, S), mask_f.reshape(B, S)


# ----------------------------------------------------------------------------
# Pure-JAX reference
# ----------------------------------------------------------------------------
def reference(output, attention_mask, token_type_ids, special_tokens_mask, W, b):
    real_mask = (attention_mask == token_type_ids).astype(jnp.int32) - special_tokens_mask
    logits = jnp.einsum('bsh,ch->bsc', output, W) + b          # (B, S, 2)
    masked = real_mask != 1
    start = jnp.where(masked, -jnp.inf, logits[..., 0])
    end = jnp.where(masked, -jnp.inf, logits[..., 1])
    return start, end, real_mask


if __name__ == "__main__":
    B, S, H = 2, 128, 32

    key = jax.random.PRNGKey(0)
    k_x, k_attn, k_tok, k_spec, k_w, k_b = jax.random.split(key, 6)

    output = jax.random.normal(k_x, (B, S, H), dtype=jnp.float32)
    attention_mask = jax.random.bernoulli(k_attn, 0.8, (B, S)).astype(jnp.int32)
    token_type_ids = jax.random.bernoulli(k_tok, 0.5, (B, S)).astype(jnp.int32)
    special_tokens_mask = jax.random.bernoulli(k_spec, 0.1, (B, S)).astype(jnp.int32)

    # nn.Linear(H, 1) default init: uniform in [-1/sqrt(H), 1/sqrt(H)].
    # Weights packed as rows (row 0 = start head, row 1 = end head) -> (2, H).
    bound = 1.0 / np.sqrt(H)
    W = jax.random.uniform(k_w, (2, H), jnp.float32, minval=-bound, maxval=bound)
    b = jax.random.uniform(k_b, (2,), jnp.float32, minval=-bound, maxval=bound)

    start, end, real_mask = qc_self_attn_head(
        output, attention_mask, token_type_ids, special_tokens_mask, W, b)
    jax.block_until_ready((start, end, real_mask))

    ref_start, ref_end, ref_mask = reference(
        output, attention_mask, token_type_ids, special_tokens_mask, W, b)

    assert jnp.allclose(start, ref_start, atol=1e-5, rtol=1e-5), "start_logits mismatch"
    assert jnp.allclose(end, ref_end, atol=1e-5, rtol=1e-5), "end_logits mismatch"
    assert jnp.array_equal(real_mask, ref_mask), "real_mask mismatch"

    print("KERNEL_OK")
</pallas_src>

<mosaic_0001>
module attributes {stable_mosaic.version = 11 : i64} {
  func.func @qc_head_kernel(%arg0: i32, %arg1: memref<256x32xf32, #tpu.memory_space<vmem>>, %arg2: memref<1x1x256xi32, #tpu.memory_space<vmem>>, %arg3: memref<1x1x256xi32, #tpu.memory_space<vmem>>, %arg4: memref<1x1x256xi32, #tpu.memory_space<vmem>>, %arg5: memref<8x32xf32, #tpu.memory_space<vmem>>, %arg6: memref<2xf32, #tpu.memory_space<smem>>, %arg7: memref<1x1x256xf32, #tpu.memory_space<vmem>>, %arg8: memref<1x1x256xf32, #tpu.memory_space<vmem>>, %arg9: memref<1x1x256xi32, #tpu.memory_space<vmem>>) attributes {dimension_semantics = [#tpu.dimension_semantics<parallel>], iteration_bounds = array<i64: 1>, scalar_prefetch = 0 : i64, scratch_operands = 0 : i64, tpu.core_type = #tpu.core_type<tc>, window_params = [{transform_indices = @transform_0, window_bounds = array<i64: 256, 32>}, {transform_indices = @transform_1, window_bounds = array<i64: 1, 1, 256>}, {transform_indices = @transform_2, window_bounds = array<i64: 1, 1, 256>}, {transform_indices = @transform_3, window_bounds = array<i64: 1, 1, 256>}, {pipeline_mode = #tpu.pipeline_mode<synchronous>, transform_indices = @transform_4, window_bounds = array<i64: 8, 32>}, {transform_indices = @transform_5, window_bounds = array<i64: 2>}, {transform_indices = @transform_6, window_bounds = array<i64: 1, 1, 256>}, {transform_indices = @transform_7, window_bounds = array<i64: 1, 1, 256>}, {transform_indices = @transform_8, window_bounds = array<i64: 1, 1, 256>}]} {
    %c0 = arith.constant 0 : index
    %c0_0 = arith.constant 0 : index
    %c0_1 = arith.constant 0 : index
    %0 = vector.load %arg2[%c0, %c0_0, %c0_1] : memref<1x1x256xi32, #tpu.memory_space<vmem>>, vector<1x1x256xi32>
    %c0_2 = arith.constant 0 : index
    %c0_3 = arith.constant 0 : index
    %c0_4 = arith.constant 0 : index
    %1 = vector.load %arg3[%c0_2, %c0_3, %c0_4] : memref<1x1x256xi32, #tpu.memory_space<vmem>>, vector<1x1x256xi32>
    %c0_5 = arith.constant 0 : index
    %c0_6 = arith.constant 0 : index
    %c0_7 = arith.constant 0 : index
    %2 = vector.load %arg4[%c0_5, %c0_6, %c0_7] : memref<1x1x256xi32, #tpu.memory_space<vmem>>, vector<1x1x256xi32>
    %3 = arith.cmpi eq, %0, %1 : vector<1x1x256xi32>
    %4 = arith.extui %3 : vector<1x1x256xi1> to vector<1x1x256xi32>
    %5 = arith.subi %4, %2 : vector<1x1x256xi32>
    %c0_8 = arith.constant 0 : index
    %c0_9 = arith.constant 0 : index
    %c0_10 = arith.constant 0 : index
    %6 = vector.load %arg9[%c0_8, %c0_9, %c0_10] : memref<1x1x256xi32, #tpu.memory_space<vmem>>, vector<1x1x256xi32>
    tpu.vector_store %arg9[%c0_8, %c0_9, %c0_10], %5 {strides = array<i32>} : memref<1x1x256xi32, #tpu.memory_space<vmem>>, vector<1x1x256xi32>,
    %c1_i32 = arith.constant 1 : i32
    %7 = vector.broadcast %c1_i32 : i32 to vector<1x1x256xi32>
    %8 = arith.cmpi eq, %5, %7 : vector<1x1x256xi32>
    %c0_11 = arith.constant 0 : index
    %c0_12 = arith.constant 0 : index
    %9 = vector.load %arg5[%c0_11, %c0_12] : memref<8x32xf32, #tpu.memory_space<vmem>>, vector<8x32xf32>
    %c0_13 = arith.constant 0 : index
    %c0_14 = arith.constant 0 : index
    %10 = vector.load %arg1[%c0_13, %c0_14] : memref<256x32xf32, #tpu.memory_space<vmem>>, vector<256x32xf32>
    %cst = arith.constant dense<0.000000e+00> : vector<8x256xf32>
    %11 = tpu.matmul %9, %10, %cst {dimension_numbers = #tpu.dot_dimension_numbers<[1], [1], [0], [0], [0, 0, 1, 0], [], []>} : vector<8x32xf32>, vector<256x32xf32>, vector<8x256xf32> -> vector<8x256xf32>
    %c0_15 = arith.constant 0 : index
    %12 = memref.load %arg6[%c0_15] : memref<2xf32, #tpu.memory_space<smem>>
    %c1 = arith.constant 1 : index
    %13 = memref.load %arg6[%c1] : memref<2xf32, #tpu.memory_space<smem>>
    %14 = vector.extract_strided_slice %11 {offsets = [0, 0], sizes = [1, 256], strides = [1, 1]} : vector<8x256xf32> to vector<1x256xf32>
    %15 = vector.broadcast %12 : f32 to vector<1x256xf32>
    %16 = arith.addf %14, %15 : vector<1x256xf32>
    %cst_16 = arith.constant 0xFF800000 : f32
    %17 = vector.shape_cast %16 : vector<1x256xf32> to vector<1x1x256xf32>
    %18 = vector.broadcast %cst_16 : f32 to vector<1x1x256xf32>
    %19 = arith.select %8, %17, %18 : vector<1x1x256xi1>, vector<1x1x256xf32>
    %c0_17 = arith.constant 0 : index
    %c0_18 = arith.constant 0 : index
    %c0_19 = arith.constant 0 : index
    %20 = vector.load %arg7[%c0_17, %c0_18, %c0_19] : memref<1x1x256xf32, #tpu.memory_space<vmem>>, vector<1x1x256xf32>
    tpu.vector_store %arg7[%c0_17, %c0_18, %c0_19], %19 {strides = array<i32>} : memref<1x1x256xf32, #tpu.memory_space<vmem>>, vector<1x1x256xf32>,
    %21 = vector.extract_strided_slice %11 {offsets = [1, 0], sizes = [1, 256], strides = [1, 1]} : vector<8x256xf32> to vector<1x256xf32>
    %22 = vector.broadcast %13 : f32 to vector<1x256xf32>
    %23 = arith.addf %21, %22 : vector<1x256xf32>
    %cst_20 = arith.constant 0xFF800000 : f32
    %24 = vector.shape_cast %23 : vector<1x256xf32> to vector<1x1x256xf32>
    %25 = vector.broadcast %cst_20 : f32 to vector<1x1x256xf32>
    %26 = arith.select %8, %24, %25 : vector<1x1x256xi1>, vector<1x1x256xf32>
    %c0_21 = arith.constant 0 : index
    %c0_22 = arith.constant 0 : index
    %c0_23 = arith.constant 0 : index
    %27 = vector.load %arg8[%c0_21, %c0_22, %c0_23] : memref<1x1x256xf32, #tpu.memory_space<vmem>>, vector<1x1x256xf32>
    tpu.vector_store %arg8[%c0_21, %c0_22, %c0_23], %26 {strides = array<i32>} : memref<1x1x256xf32, #tpu.memory_space<vmem>>, vector<1x1x256xf32>,
    return
  }
  func.func @transform_0(%arg0: i32) -> (i32, i32) {
    %c0_i32 = arith.constant 0 : i32
    %c0_i32_0 = arith.constant 0 : i32
    return %arg0, %c0_i32 : i32, i32
  }
  func.func @transform_1(%arg0: i32) -> (i32, i32, i32) {
    %c0_i32 = arith.constant 0 : i32
    %c0_i32_0 = arith.constant 0 : i32
    %c0_i32_1 = arith.constant 0 : i32
    return %arg0, %c0_i32, %c0_i32_0 : i32, i32, i32
  }
  func.func @transform_2(%arg0: i32) -> (i32, i32, i32) {
    %c0_i32 = arith.constant 0 : i32
    %c0_i32_0 = arith.constant 0 : i32
    %c0_i32_1 = arith.constant 0 : i32
    return %arg0, %c0_i32, %c0_i32_0 : i32, i32, i32
  }
  func.func @transform_3(%arg0: i32) -> (i32, i32, i32) {
    %c0_i32 = arith.constant 0 : i32
    %c0_i32_0 = arith.constant 0 : i32
    %c0_i32_1 = arith.constant 0 : i32
    return %arg0, %c0_i32, %c0_i32_0 : i32, i32, i32
  }
  func.func @transform_4(%arg0: i32) -> (i32, i32) {
    %c0_i32 = arith.constant 0 : i32
    %c0_i32_0 = arith.constant 0 : i32
    %c0_i32_1 = arith.constant 0 : i32
    return %c0_i32, %c0_i32_0 : i32, i32
  }
  func.func @transform_5(%arg0: i32) -> i32 {
    %c0_i32 = arith.constant 0 : i32
    %c0_i32_0 = arith.constant 0 : i32
    return %c0_i32 : i32
  }
  func.func @transform_6(%arg0: i32) -> (i32, i32, i32) {
    %c0_i32 = arith.constant 0 : i32
    %c0_i32_0 = arith.constant 0 : i32
    %c0_i32_1 = arith.constant 0 : i32
    return %arg0, %c0_i32, %c0_i32_0 : i32, i32, i32
  }
  func.func @transform_7(%arg0: i32) -> (i32, i32, i32) {
    %c0_i32 = arith.constant 0 : i32
    %c0_i32_0 = arith.constant 0 : i32
    %c0_i32_1 = arith.constant 0 : i32
    return %arg0, %c0_i32, %c0_i32_0 : i32, i32, i32
  }
  func.func @transform_8(%arg0: i32) -> (i32, i32, i32) {
    %c0_i32 = arith.constant 0 : i32
    %c0_i32_0 = arith.constant 0 : i32
    %c0_i32_1 = arith.constant 0 : i32
    return %arg0, %c0_i32, %c0_i32_0 : i32, i32, i32
  }
}

</mosaic_0001>

<bundles_post_ra>
// kernel: tpu_custom_call.1
= control target key start
LH: loop header
LB: loop body
LE: loop exit
PB: predicated region body
PF: predicated region fallthrough
CT: control target
= control target key end

     0   :  { %14 = vsyncpa [#allocation4], 0  ;;  %s816_s0 = inlined_call_operand.vmem [shape: f32[256,32], index: 0, kind: input, shape index: {}]   ;;  %s817_s1 = inlined_call_operand.vmem [shape: s32[1,1,256], index: 1, kind: input, shape index: {}]   ;;  %s818_s2 = inlined_call_operand.vmem [shape: s32[1,1,256], index: 2, kind: input, shape index: {}]   ;;  %s819_s3 = inlined_call_operand.vmem [shape: s32[1,1,256], index: 3, kind: input, shape index: {}]   ;;  %s820_s4 = inlined_call_operand.vmem [shape: f32[8,32], index: 4, kind: input, shape index: {}]   ;;  %s821_s5 = inlined_call_operand.vmem [shape: f32[2], index: 5, kind: input, shape index: {}]   ;;  %s822_s6 = inlined_call_operand.hbm [shape: f32[1,1,256], index: 6, kind: output, shape index: {0}]   ;;  %s823_s7 = inlined_call_operand.hbm [shape: f32[1,1,256], index: 7, kind: output, shape index: {1}]   ;;  %s824_s8 = inlined_call_operand.hbm [shape: s32[1,1,256], index: 8, kind: output, shape index: {2}]  }
   0x1   :  { %15 = vsyncpa [#allocation3], 0 }
   0x2   :  { %16 = vsyncpa [#allocation7], 0  ;;  %s33_s29 = sshll.u32 %s821_s5, 4  ;;  %s34_s29 = int_to_ptr.vmem [resolvable:$true] %s33_s29 }
   0x3   :  { %s470_s30 = scalar_lea.vmem %s34_s29, 16  ;;  %p475_p1 = scmp.lt.s32.totalorder %s34_s29, %s34_s29 }
   0x4   :  { %p471_p0 = scmp.ne.s32.totalorder %s34_s29, %s470_s30  ;;  %p476_p2 = scmp.lt.s32.totalorder %s470_s30, %s470_s30 }
   0x6   :  { %p477_p3 = por %p476_p2, %p475_p1 }
   0x8   :  { %p478_p4 = pnand %p477_p3, %p471_p0 }
   0xa   :  { %481 = shalt.err (!%p478_p4)
}
   0xb   :  { %s554_s9 = smov [#allocation2]  }
   0xc   :  { %36 = dma.vmem_to_smem %s34_s29, 16, %s554_s9, [#allocation4]  }
   0xd   :  { %548 = dma.done.wait [#allocation4], 16  }
   0xe   :  { %549 = vsyncadd [#allocation4], 4294967280 }
   0xf   :  { %40 = sfence }
  0x10   :  { %v70_v0 = vld [vmem:[%s816_s0 + $0x80] sm:$0xff]  ;;  %v71_v1 = vld [vmem:[%s816_s0 + $0x88] sm:$0xff]  ;;  %vm86_vm0 = vcmask 261120   ;;  %v72_v6 = vld [vmem:[%s816_s0 + $0x90] sm:$0xff]  ;;  %v47_v52 = vlaneseq  ;;  %v555_v54 = vmov 0   ;;  %s558_s11 = smov [#allocation6]  }
  0x11   :  { %v54_v2 = vld [vmem:[%s816_s0] sm:$0xff]  ;;  %v416_v3 = vpack.c.bf16 %v71_v1, %v70_v0  ;;  %vm619_vm1 = vmpackc.low %vm86_vm0, %vm86_vm0  ;;  %v55_v5 = vld [vmem:[%s816_s0 + $0x8] sm:$0xff]  ;;  %v556_v58 = vmov 1966171168   ;;  %s322_s12 = sshll.u32 %s558_s11, 4  ;;  %s559_s13 = smov [#allocation8]   ;;  %s762_s12 = int_to_ptr.vmem [resolvable:$true] %s322_s12 }
  0x12   :  { %v419_v7 = vpack.c.bf16 %v55_v5, %v54_v2  ;;  %v73_v8 = vld [vmem:[%s816_s0 + $0x98] sm:$0xff]  ;;  %v56_v10 = vld [vmem:[%s816_s0 + $0x10] sm:$0xff]  ;;  %v74_v12 = vld [vmem:[%s816_s0 + $0xa0] sm:$0xff]  ;;  %vm756_vm3 = vcmp.lt.s32.totalorder %v47_v52, 256  ;;  %v266_v59 = vunpack.c.l.s4 %v556_v58  ;;  %v269_v62 = vshrl.u32 %v47_v52, 7  ;;  %s332_s5 = sshll.u32 %s559_s13, 4  ;;  %s766_s5 = int_to_ptr.vmem [resolvable:$true] %s332_s5 }
  0x13   :  { %418 = vmatprep.subr.msk.bf16.mxu0 %vm619_vm1, %v416_v3  ;;  %v422_v9 = vpack.c.bf16 %v73_v8, %v72_v6  ;;  %v57_v11 = vld [vmem:[%s816_s0 + $0x18] sm:$0xff]  ;;  %v75_v13 = vld [vmem:[%s816_s0 + $0xa8] sm:$0xff]  ;;  %v53_v16 = vld [vmem:[%s820_s4] sm:$0xff] }
  0x14   :  { %421 = vmatpush3.bf16.xpose.msk.msra.mxu0 %vm619_vm1, %v419_v7  ;;  %v425_v14 = vpack.c.bf16 %v57_v11, %v56_v10  ;;  %v428_v15 = vpack.c.bf16 %v75_v13, %v74_v12  ;;  %414 = vmatprep.mubr.msk.f32.mxu0 %vm86_vm0, %v53_v16  ;;  %v58_v17 = vld [vmem:[%s816_s0 + $0x20] sm:$0xff]  ;;  %v59_v18 = vld [vmem:[%s816_s0 + $0x28] sm:$0xff]  ;;  %v76_v19 = vld [vmem:[%s816_s0 + $0xb0] sm:$0xff]  ;;  %v267_v61 = vunpack.c.0.s8 %v266_v59 }
  0x15   :  { %424 = vmatprep.subr.msk.bf16.mxu0 %vm619_vm1, %v422_v9  ;;  %v77_v20 = vld [vmem:[%s816_s0 + $0xb8] sm:$0xff]  ;;  %v431_v21 = vpack.c.bf16 %v59_v18, %v58_v17  ;;  %v60_v23 = vld [vmem:[%s816_s0 + $0x30] sm:$0xff]  ;;  %v78_v25 = vld [vmem:[%s816_s0 + $0xc0] sm:$0xff] }
  0x16   :  { %v434_v22 = vpack.c.bf16 %v77_v20, %v76_v19  ;;  %v61_v24 = vld [vmem:[%s816_s0 + $0x38] sm:$0xff]  ;;  %v79_v26 = vld [vmem:[%s816_s0 + $0xc8] sm:$0xff]  ;;  %v62_v29 = vld [vmem:[%s816_s0 + $0x40] sm:$0xff]  ;;  %v270_v5 = vsub.s32 %v267_v61, %v269_v62 }
  0x17   :  { %v437_v27 = vpack.c.bf16 %v61_v24, %v60_v23  ;;  %v440_v28 = vpack.c.bf16 %v79_v26, %v78_v25  ;;  %v63_v30 = vld [vmem:[%s816_s0 + $0x48] sm:$0xff]  ;;  %v80_v31 = vld [vmem:[%s816_s0 + $0xd0] sm:$0xff]  ;;  %v81_v32 = vld [vmem:[%s816_s0 + $0xd8] sm:$0xff] }
  0x18   :  { %v443_v33 = vpack.c.bf16 %v63_v30, %v62_v29  ;;  %v446_v34 = vpack.c.bf16 %v81_v32, %v80_v31  ;;  %v64_v35 = vld [vmem:[%s816_s0 + $0x50] sm:$0xff]  ;;  %v65_v36 = vld [vmem:[%s816_s0 + $0x58] sm:$0xff]  ;;  %v82_v37 = vld [vmem:[%s816_s0 + $0xe0] sm:$0xff] }
  0x19   :  { %v83_v38 = vld [vmem:[%s816_s0 + $0xe8] sm:$0xff]  ;;  %v449_v39 = vpack.c.bf16 %v65_v36, %v64_v35  ;;  %v66_v41 = vld [vmem:[%s816_s0 + $0x60] sm:$0xff]  ;;  %v84_v43 = vld [vmem:[%s816_s0 + $0xf0] sm:$0xff] }
  0x1a   :  { %v452_v40 = vpack.c.bf16 %v83_v38, %v82_v37  ;;  %v67_v42 = vld [vmem:[%s816_s0 + $0x68] sm:$0xff]  ;;  %v85_v44 = vld [vmem:[%s816_s0 + $0xf8] sm:$0xff]  ;;  %v68_v47 = vld [vmem:[%s816_s0 + $0x70] sm:$0xff] }
  0x1b   :  { %v455_v45 = vpack.c.bf16 %v67_v42, %v66_v41  ;;  %v458_v46 = vpack.c.bf16 %v85_v44, %v84_v43  ;;  %v69_v48 = vld [vmem:[%s816_s0 + $0x78] sm:$0xff]  ;;  %v41_v50 = vld [vmem:[%s817_s1] sm:$0x3]  ;;  %s257_s0 = sld [smem:[#allocation2]]  ;;  %s381_s1 = sld [smem:[#allocation2 + $0x1]] }
  0x1c   :  { %427 = vmatpush3.bf16.xpose.msk.msra.mxu0 %vm619_vm1, %v425_v14  ;;  %v461_v49 = vpack.c.bf16 %v69_v48, %v68_v47  ;;  %v42_v51 = vld [vmem:[%s818_s2] sm:$0x3]  ;;  %s557_s2 = smov [#allocation5]  }
  0x1d   :  { %430 = vmatprep.subr.msk.bf16.mxu0 %vm619_vm1, %v428_v15  ;;  %vm44_vm2 = vcmp.eq.s32.totalorder %v41_v50, %v42_v51  ;;  %v43_v53 = vld [vmem:[%s819_s3] sm:$0x3]  ;;  %s312_s3 = sshll.u32 %s557_s2, 4  ;;  %s313_s3 = int_to_ptr.vmem [resolvable:$true] %s312_s3 }
  0x1e   :  { %v45_v55 = vsel %vm44_vm2, 1, %v555_v54  ;;  %s482_s4 = scalar_lea.vmem %s313_s3, 32  ;;  %p487_p6 = scmp.lt.s32.totalorder %s313_s3, %s313_s3 }
  0x1f   :  { %v46_v56 = vsub.s32 %v45_v55, %v43_v53  ;;  %p483_p5 = scmp.ne.s32.totalorder %s313_s3, %s482_s4  ;;  %p488_p7 = scmp.lt.s32.totalorder %s482_s4, %s482_s4 }
  0x21   :  { %51 = vst.msk [vmem:[#allocation8] sm:$0x3] %vm756_vm3, %v46_v56  ;;  %v259_v60 = vstv %s257_s0  ;;  %v282_v63 = vstv %s381_s1  ;;  %vm52_vm4 = vcmp.eq.s32.totalorder %v46_v56, 1  ;;  %p489_p8 = por %p488_p7, %p487_p6 }
  0x23   :  { %p490_p9 = pnand %p489_p8, %p483_p5 }
  0x24   :  { %433 = vmatpush3.bf16.xpose.msk.msra.mxu0 %vm619_vm1, %v431_v21 }
  0x25   :  { %436 = vmatprep.subr.msk.bf16.mxu0 %vm619_vm1, %v434_v22 }
  0x2c   :  { %439 = vmatpush3.bf16.xpose.msk.msra.mxu0 %vm619_vm1, %v437_v27 }
  0x2d   :  { %442 = vmatprep.subr.msk.bf16.mxu0 %vm619_vm1, %v440_v28 }
  0x34   :  { %445 = vmatpush3.bf16.xpose.msk.msra.mxu0 %vm619_vm1, %v443_v33 }
  0x35   :  { %448 = vmatprep.subr.msk.bf16.mxu0 %vm619_vm1, %v446_v34 }
  0x3c   :  { %451 = vmatpush3.bf16.xpose.msk.msra.mxu0 %vm619_vm1, %v449_v39 }
  0x3d   :  { %454 = vmatprep.subr.msk.bf16.mxu0 %vm619_vm1, %v452_v40 }
  0x44   :  { %457 = vmatpush3.bf16.xpose.msk.msra.mxu0 %vm619_vm1, %v455_v45 }
  0x45   :  { %460 = vmatprep.subr.msk.bf16.mxu0 %vm619_vm1, %v458_v46 }
  0x4c   :  { %463 = vmatpush3.bf16.xpose.msk.msra.mxu0 %vm619_vm1, %v461_v49 }
  0x53   :  { %415 = vmatmul.mubr.msk.f32.vlgmr.msra.gmra.mrb[0].mxu0 %vm86_vm0, %v53_v16 }
 0x126   :  { %v252_v0 = vpop.f32.mrb[0].mxu0 }
 0x127   :  { %v254_v1 = vpop.f32.mrb[1].mxu0  ;;  %v260_v2 = vadd.f32 %v259_v60, %v252_v0  ;;  %v283_v3 = vadd.f32 %v282_v63, %v252_v0 }
 0x128   :  { %v261_v4 = vadd.f32 %v259_v60, %v254_v1  ;;  %v284_v6 = vadd.f32 %v282_v63, %v254_v1 }
 0x12a   :  { %v264_v7 = vcombine.low %v260_v2, %v261_v4  ;;  %v287_v8 = vcombine.low %v283_v3, %v284_v6 }
 0x12c   :  { %v271_v9 = vrot.slane %v264_v7, %v270_v5  ;;  %v294_v10 = vrot.slane %v287_v8, %v270_v5 }
 0x12e   :  { %v295_v11 = vcombine.high %v294_v10, %v294_v10  ;;  %v278_v12 = vrot.slane %v271_v9, %v270_v5 }
 0x130   :  { %v302_v13 = vrot.slane %v295_v11, %v270_v5  ;;  %v280_v14 = vsel %vm52_vm4, %v278_v12, -inf }
 0x131   :  { %281 = vst.msk [vmem:[#allocation5] sm:$0x3] %vm756_vm3, %v280_v14 }
 0x132   :  { %v304_v15 = vsel %vm52_vm4, %v302_v13, -inf }
 0x133   :  { %493 = shalt.err (!%p490_p9)
}
 0x134   :  { %s494_s16 = scalar_lea.hbm %s822_s6, 32 }
 0x135   :  { %p495_p10 = scmp.ne.s32.totalorder %s822_s6, %s494_s16  ;;  %p498_p11 = scmp.lt.u32.totalorder %s494_s16, %s822_s6 }
 0x137   :  { %p500_p12 = pnand %p498_p11, %p495_p10 }
 0x139   :  { %503 = shalt.err (!%p500_p12)
}
 0x13a   :  { %315 = dma.vmem_to_hbm [thread:$0]  %s313_s3, 32, %s822_s6, [#allocation3]   ;;  %305 = vst.msk [vmem:[#allocation6] sm:$0x3] %vm756_vm3, %v304_v15 }
 0x13b   :  { %s504_s23 = scalar_lea.vmem %s762_s12, 32  ;;  %p509_p0 = scmp.lt.s32.totalorder %s762_s12, %s762_s12 }
 0x13c   :  { %p505_p13 = scmp.ne.s32.totalorder %s762_s12, %s504_s23  ;;  %p510_p1 = scmp.lt.s32.totalorder %s504_s23, %s504_s23 }
 0x13e   :  { %p511_p2 = por %p510_p1, %p509_p0 }
 0x140   :  { %p512_p3 = pnand %p511_p2, %p505_p13 }
 0x142   :  { %515 = shalt.err (!%p512_p3)
}
 0x143   :  { %s516_s26 = scalar_lea.hbm %s823_s7, 32 }
 0x144   :  { %p517_p4 = scmp.ne.s32.totalorder %s823_s7, %s516_s26  ;;  %p520_p5 = scmp.lt.u32.totalorder %s516_s26, %s823_s7 }
 0x146   :  { %p522_p6 = pnand %p520_p5, %p517_p4 }
 0x148   :  { %525 = shalt.err (!%p522_p6)
}
 0x149   :  { %325 = dma.vmem_to_hbm [thread:$0]  %s762_s12, 32, %s823_s7, [#allocation7]  }
 0x14a   :  { %s526_s10 = scalar_lea.vmem %s766_s5, 32  ;;  %p531_p8 = scmp.lt.s32.totalorder %s766_s5, %s766_s5 }
 0x14b   :  { %p527_p7 = scmp.ne.s32.totalorder %s766_s5, %s526_s10  ;;  %p532_p9 = scmp.lt.s32.totalorder %s526_s10, %s526_s10 }
 0x14d   :  { %p533_p10 = por %p532_p9, %p531_p8 }
 0x14f   :  { %p534_p11 = pnand %p533_p10, %p527_p7 }
 0x151   :  { %537 = shalt.err (!%p534_p11)
}
 0x152   :  { %s538_s2 = scalar_lea.hbm %s824_s8, 32 }
 0x153   :  { %p539_p12 = scmp.ne.s32.totalorder %s824_s8, %s538_s2  ;;  %p542_p13 = scmp.lt.u32.totalorder %s538_s2, %s824_s8 }
 0x155   :  { %p544_p0 = pnand %p542_p13, %p539_p12 }
 0x157   :  { %547 = shalt.err (!%p544_p0)
}
 0x158   :  { %335 = dma.vmem_to_hbm [thread:$0]  %s766_s5, 32, %s824_s8, [#allocation7]  }
 0x159   :  { %550 = dma.done.wait [#allocation3], 32  }
 0x15a   :  { %551 = vsyncadd [#allocation3], 4294967264 }
 0x15b   :  { %552 = dma.done.wait [#allocation7], 64  }
 0x15c   :  { %553 = vsyncadd [#allocation7], 4294967232 }
 0x15d   :  { %345 = vsyncpa [#allocation3], 1 }
 0x15e   :  { %346 = vsyncpa [#allocation7], 1 }
 0x15f   :  { %347 = vsyncpa [#allocation4], 1 }

</bundles_post_ra>
